<compile_context>
chip_gen: v7x
topology: tpu7x:2x2x1
jax: 0.10.0
libtpu: 0.0.40
codegen_flags: <defaults>
</compile_context>

<pallas_src>
import jax
import jax.numpy as jnp
from jax.experimental import pallas as pl
from jax.experimental.pallas import tpu as pltpu

_LANE = 128
_SUBLANE = 8


def _round_up(x, m):
    return ((x + m - 1) // m) * m


def decoder_kernel(z_ref, wpos_ref,
                   w0_ref, b0_ref,
                   w1_ref, b1_ref,
                   w2_ref, b2_ref,
                   out_ref):
    cdt = wpos_ref.dtype          # matmul operand dtype (bf16 by default)
    z = z_ref[...]

    # --- LinearPositive: y = z @ softplus(W_pos)  (softplus precomputed,
    #     weight already transposed to [latent, out]; no bias)
    y = jnp.dot(z, wpos_ref[...], preferred_element_type=jnp.float32)

    # --- NonlinearTransform: out_dim -> h0 -> h1 -> out_dim, tanh in between.
    #     Matmuls in cdt on the MXU, accumulation / bias / tanh in f32.
    h = jnp.tanh(jnp.dot(y.astype(cdt), w0_ref[...],
                         preferred_element_type=jnp.float32) + b0_ref[...])
    h = jnp.tanh(jnp.dot(h.astype(cdt), w1_ref[...],
                         preferred_element_type=jnp.float32) + b1_ref[...])
    x = (jnp.dot(h.astype(cdt), w2_ref[...],
                 preferred_element_type=jnp.float32) + b2_ref[...])

    out_ref[...] = x.astype(out_ref.dtype)


def _prepare_inputs(z, params, compute_dtype, block_batch):
    """Wrapper-side layout work: softplus, transpose to [in,out], zero-pad to
    lane multiples, cast matmul operands to compute_dtype, tile the batch."""
    batch, latent_dim = z.shape
    output_dim = params["w_pos"].shape[0]
    h0 = params["w0"].shape[0]
    h1 = params["w1"].shape[0]

    lp = _round_up(latent_dim, _LANE)
    fp = _round_up(output_dim, _LANE)
    h0p = _round_up(h0, _LANE)
    h1p = _round_up(h1, _LANE)

    def pad2(x, r, c):
        return jnp.pad(x, ((0, r - x.shape[0]), (0, c - x.shape[1])))

    # Positivity constraint applied once here (padding AFTER softplus so the
    # padded rows/cols stay exactly zero and do not perturb the result).
    w_pos = jax.nn.softplus(params["w_pos"].astype(jnp.float32)).T       # [lat, out]
    w_pos = pad2(w_pos, lp, fp).astype(compute_dtype)
    w0 = pad2(params["w0"].astype(jnp.float32).T, fp, h0p).astype(compute_dtype)
    w1 = pad2(params["w1"].astype(jnp.float32).T, h0p, h1p).astype(compute_dtype)
    w2 = pad2(params["w2"].astype(jnp.float32).T, h1p, fp).astype(compute_dtype)
    b0 = pad2(params["b0"].astype(jnp.float32), 1, h0p)
    b1 = pad2(params["b1"].astype(jnp.float32), 1, h1p)
    b2 = pad2(params["b2"].astype(jnp.float32), 1, fp)

    # Batch tiling: TB rows per grid step (multiple of 8 sublanes).
    bp_min = _round_up(batch, _SUBLANE)
    tb = min(_round_up(block_batch, _SUBLANE), bp_min)
    b_pad = _round_up(batch, tb)
    z_p = pad2(z.astype(jnp.float32), b_pad, lp).astype(compute_dtype)

    return z_p, w_pos, w0, b0, w1, b1, w2, b2, tb


def decoder_forward(z, params, *, compute_dtype=jnp.bfloat16, block_batch=1024):
    """Pallas decoder forward. Weights stay VMEM-resident across the batch grid."""
    batch = z.shape[0]
    output_dim = params["w_pos"].shape[0]

    z_p, w_pos, w0, b0, w1, b1, w2, b2, tb = _prepare_inputs(
        z, params, compute_dtype, block_batch)

    b_pad, lp = z_p.shape
    fp = w_pos.shape[1]
    h0p = w0.shape[1]
    h1p = w1.shape[1]
    grid = (b_pad // tb,)

    const = lambda i: (0, 0)   # weights/biases: same block every step (resident)

    out_padded = pl.pallas_call(
        decoder_kernel,
        out_shape=jax.ShapeDtypeStruct((b_pad, fp), jnp.float32),
        grid=grid,
        in_specs=[
            pl.BlockSpec((tb, lp), lambda i: (i, 0)),    # z tile
            pl.BlockSpec((lp, fp), const),               # softplus(W_pos)^T
            pl.BlockSpec((fp, h0p), const),              # w0^T
            pl.BlockSpec((1, h0p), const),               # b0
            pl.BlockSpec((h0p, h1p), const),             # w1^T
            pl.BlockSpec((1, h1p), const),               # b1
            pl.BlockSpec((h1p, fp), const),              # w2^T
            pl.BlockSpec((1, fp), const),                # b2
        ],
        out_specs=pl.BlockSpec((tb, fp), lambda i: (i, 0)),
        compiler_params=pltpu.CompilerParams(
            dimension_semantics=("parallel",)),          # v7x: shard batch over 2 TCs
    )(z_p, w_pos, w0, b0, w1, b1, w2, b2)

    return out_padded[:batch, :output_dim]


def decoder_reference(z, params):
    """Pure-JAX f32 reference for correctness checking."""
    w_pos = jax.nn.softplus(params["w_pos"])
    y = z @ w_pos.T
    h = jnp.tanh(y @ params["w0"].T + params["b0"])
    h = jnp.tanh(h @ params["w1"].T + params["b1"])
    return h @ params["w2"].T + params["b2"]


def init_params(key, latent_dim, output_dim, hidden_layers):
    """Deterministic synthetic parameter init (PyTorch-Linear-like uniform).
    Weights kept in the nn.Linear [out_features, in_features] convention;
    layout work for the kernel happens in the wrapper."""
    sizes = [output_dim] + list(hidden_layers) + [output_dim]
    keys = jax.random.split(key, 1 + 2 * (len(sizes) - 1))

    def uni(k, shape, fan_in):
        bound = 1.0 / jnp.sqrt(fan_in)
        return jax.random.uniform(k, shape, jnp.float32, -bound, bound)

    params = {"w_pos": uni(keys[0], (output_dim, latent_dim), latent_dim)}
    ki = 1
    for li, (fin, fout) in enumerate(zip(sizes[:-1], sizes[1:])):
        params[f"w{li}"] = uni(keys[ki], (fout, fin), fin)
        params[f"b{li}"] = uni(keys[ki + 1], (1, fout), fin)
        ki += 2
    return params


if __name__ == "__main__":
    latent_dim = 16
    output_dim = 32
    hidden_layers = [64, 64]
    batch = 8

    key = jax.random.PRNGKey(0)
    k_z, k_p = jax.random.split(key)

    z = jax.random.normal(k_z, (batch, latent_dim), dtype=jnp.float32)
    params = init_params(k_p, latent_dim, output_dim, hidden_layers)

    ref = decoder_reference(z, params)

    # f32 compute path: bit-for-bit-class check against the pure-JAX reference.
    out_f32 = jax.block_until_ready(
        decoder_forward(z, params, compute_dtype=jnp.float32))
    assert out_f32.shape == (batch, output_dim)
    assert jnp.allclose(out_f32, ref, atol=1e-5, rtol=1e-5), (
        f"f32 path: max abs diff {jnp.max(jnp.abs(out_f32 - ref))}")

    # Default bf16-MXU path (v6e/v7x fast path): loose tolerance vs f32 ref.
    out_bf16 = jax.block_until_ready(decoder_forward(z, params))
    assert out_bf16.shape == (batch, output_dim)
    assert jnp.allclose(out_bf16, ref, atol=5e-2, rtol=5e-2), (
        f"bf16 path: max abs diff {jnp.max(jnp.abs(out_bf16 - ref))}")

    print("KERNEL_OK")
</pallas_src>

<mosaic_0001>
module attributes {stable_mosaic.version = 11 : i64} {
  func.func @decoder_kernel(%arg0: i32, %arg1: memref<8x128xf32, #tpu.memory_space<vmem>>, %arg2: memref<128x128xf32, #tpu.memory_space<vmem>>, %arg3: memref<128x128xf32, #tpu.memory_space<vmem>>, %arg4: memref<1x128xf32, #tpu.memory_space<vmem>>, %arg5: memref<128x128xf32, #tpu.memory_space<vmem>>, %arg6: memref<1x128xf32, #tpu.memory_space<vmem>>, %arg7: memref<128x128xf32, #tpu.memory_space<vmem>>, %arg8: memref<1x128xf32, #tpu.memory_space<vmem>>, %arg9: memref<8x128xf32, #tpu.memory_space<vmem>>) attributes {dimension_semantics = [#tpu.dimension_semantics<parallel>], iteration_bounds = array<i64: 1>, scalar_prefetch = 0 : i64, scratch_operands = 0 : i64, tpu.core_type = #tpu.core_type<tc>, window_params = [{transform_indices = @transform_0, window_bounds = array<i64: 8, 128>}, {pipeline_mode = #tpu.pipeline_mode<synchronous>, transform_indices = @transform_1, window_bounds = array<i64: 128, 128>}, {pipeline_mode = #tpu.pipeline_mode<synchronous>, transform_indices = @transform_2, window_bounds = array<i64: 128, 128>}, {pipeline_mode = #tpu.pipeline_mode<synchronous>, transform_indices = @transform_3, window_bounds = array<i64: 1, 128>}, {pipeline_mode = #tpu.pipeline_mode<synchronous>, transform_indices = @transform_4, window_bounds = array<i64: 128, 128>}, {pipeline_mode = #tpu.pipeline_mode<synchronous>, transform_indices = @transform_5, window_bounds = array<i64: 1, 128>}, {pipeline_mode = #tpu.pipeline_mode<synchronous>, transform_indices = @transform_6, window_bounds = array<i64: 128, 128>}, {pipeline_mode = #tpu.pipeline_mode<synchronous>, transform_indices = @transform_7, window_bounds = array<i64: 1, 128>}, {transform_indices = @transform_8, window_bounds = array<i64: 8, 128>}]} {
    %c0 = arith.constant 0 : index
    %c0_0 = arith.constant 0 : index
    %0 = vector.load %arg1[%c0, %c0_0] : memref<8x128xf32, #tpu.memory_space<vmem>>, vector<8x128xf32>
    %c0_1 = arith.constant 0 : index
    %c0_2 = arith.constant 0 : index
    %1 = vector.load %arg2[%c0_1, %c0_2] : memref<128x128xf32, #tpu.memory_space<vmem>>, vector<128x128xf32>
    %cst = arith.constant dense<0.000000e+00> : vector<8x128xf32>
    %2 = tpu.matmul %0, %1, %cst {dimension_numbers = #tpu.dot_dimension_numbers<[1], [0], [0], [1], [0, 0, 1, 1], [], []>} : vector<8x128xf32>, vector<128x128xf32>, vector<8x128xf32> -> vector<8x128xf32>
    %c0_3 = arith.constant 0 : index
    %c0_4 = arith.constant 0 : index
    %3 = vector.load %arg3[%c0_3, %c0_4] : memref<128x128xf32, #tpu.memory_space<vmem>>, vector<128x128xf32>
    %cst_5 = arith.constant dense<0.000000e+00> : vector<8x128xf32>
    %4 = tpu.matmul %2, %3, %cst_5 {dimension_numbers = #tpu.dot_dimension_numbers<[1], [0], [0], [1], [0, 0, 1, 1], [], []>} : vector<8x128xf32>, vector<128x128xf32>, vector<8x128xf32> -> vector<8x128xf32>
    %c0_6 = arith.constant 0 : index
    %c0_7 = arith.constant 0 : index
    %5 = vector.load %arg4[%c0_6, %c0_7] : memref<1x128xf32, #tpu.memory_space<vmem>>, vector<1x128xf32>
    %6 = vector.broadcast %5 : vector<1x128xf32> to vector<8x128xf32>
    %7 = arith.addf %4, %6 : vector<8x128xf32>
    %8 = math.tanh %7 : vector<8x128xf32>
    %c0_8 = arith.constant 0 : index
    %c0_9 = arith.constant 0 : index
    %9 = vector.load %arg5[%c0_8, %c0_9] : memref<128x128xf32, #tpu.memory_space<vmem>>, vector<128x128xf32>
    %cst_10 = arith.constant dense<0.000000e+00> : vector<8x128xf32>
    %10 = tpu.matmul %8, %9, %cst_10 {dimension_numbers = #tpu.dot_dimension_numbers<[1], [0], [0], [1], [0, 0, 1, 1], [], []>} : vector<8x128xf32>, vector<128x128xf32>, vector<8x128xf32> -> vector<8x128xf32>
    %c0_11 = arith.constant 0 : index
    %c0_12 = arith.constant 0 : index
    %11 = vector.load %arg6[%c0_11, %c0_12] : memref<1x128xf32, #tpu.memory_space<vmem>>, vector<1x128xf32>
    %12 = vector.broadcast %11 : vector<1x128xf32> to vector<8x128xf32>
    %13 = arith.addf %10, %12 : vector<8x128xf32>
    %14 = math.tanh %13 : vector<8x128xf32>
    %c0_13 = arith.constant 0 : index
    %c0_14 = arith.constant 0 : index
    %15 = vector.load %arg7[%c0_13, %c0_14] : memref<128x128xf32, #tpu.memory_space<vmem>>, vector<128x128xf32>
    %cst_15 = arith.constant dense<0.000000e+00> : vector<8x128xf32>
    %16 = tpu.matmul %14, %15, %cst_15 {dimension_numbers = #tpu.dot_dimension_numbers<[1], [0], [0], [1], [0, 0, 1, 1], [], []>} : vector<8x128xf32>, vector<128x128xf32>, vector<8x128xf32> -> vector<8x128xf32>
    %c0_16 = arith.constant 0 : index
    %c0_17 = arith.constant 0 : index
    %17 = vector.load %arg8[%c0_16, %c0_17] : memref<1x128xf32, #tpu.memory_space<vmem>>, vector<1x128xf32>
    %18 = vector.broadcast %17 : vector<1x128xf32> to vector<8x128xf32>
    %19 = arith.addf %16, %18 : vector<8x128xf32>
    %c0_18 = arith.constant 0 : index
    %c0_19 = arith.constant 0 : index
    %20 = vector.load %arg9[%c0_18, %c0_19] : memref<8x128xf32, #tpu.memory_space<vmem>>, vector<8x128xf32>
    tpu.vector_store %arg9[%c0_18, %c0_19], %19 {strides = array<i32>} : memref<8x128xf32, #tpu.memory_space<vmem>>, vector<8x128xf32>,
    return
  }
  func.func @transform_0(%arg0: i32) -> (i32, i32) {
    %c0_i32 = arith.constant 0 : i32
    %c0_i32_0 = arith.constant 0 : i32
    return %arg0, %c0_i32 : i32, i32
  }
  func.func @transform_1(%arg0: i32) -> (i32, i32) {
    %c0_i32 = arith.constant 0 : i32
    %c0_i32_0 = arith.constant 0 : i32
    %c0_i32_1 = arith.constant 0 : i32
    return %c0_i32, %c0_i32_0 : i32, i32
  }
  func.func @transform_2(%arg0: i32) -> (i32, i32) {
    %c0_i32 = arith.constant 0 : i32
    %c0_i32_0 = arith.constant 0 : i32
    %c0_i32_1 = arith.constant 0 : i32
    return %c0_i32, %c0_i32_0 : i32, i32
  }
  func.func @transform_3(%arg0: i32) -> (i32, i32) {
    %c0_i32 = arith.constant 0 : i32
    %c0_i32_0 = arith.constant 0 : i32
    %c0_i32_1 = arith.constant 0 : i32
    return %c0_i32, %c0_i32_0 : i32, i32
  }
  func.func @transform_4(%arg0: i32) -> (i32, i32) {
    %c0_i32 = arith.constant 0 : i32
    %c0_i32_0 = arith.constant 0 : i32
    %c0_i32_1 = arith.constant 0 : i32
    return %c0_i32, %c0_i32_0 : i32, i32
  }
  func.func @transform_5(%arg0: i32) -> (i32, i32) {
    %c0_i32 = arith.constant 0 : i32
    %c0_i32_0 = arith.constant 0 : i32
    %c0_i32_1 = arith.constant 0 : i32
    return %c0_i32, %c0_i32_0 : i32, i32
  }
  func.func @transform_6(%arg0: i32) -> (i32, i32) {
    %c0_i32 = arith.constant 0 : i32
    %c0_i32_0 = arith.constant 0 : i32
    %c0_i32_1 = arith.constant 0 : i32
    return %c0_i32, %c0_i32_0 : i32, i32
  }
  func.func @transform_7(%arg0: i32) -> (i32, i32) {
    %c0_i32 = arith.constant 0 : i32
    %c0_i32_0 = arith.constant 0 : i32
    %c0_i32_1 = arith.constant 0 : i32
    return %c0_i32, %c0_i32_0 : i32, i32
  }
  func.func @transform_8(%arg0: i32) -> (i32, i32) {
    %c0_i32 = arith.constant 0 : i32
    %c0_i32_0 = arith.constant 0 : i32
    return %arg0, %c0_i32 : i32, i32
  }
}

</mosaic_0001>

<bundles_post_ra>
// kernel: tpu_custom_call.1
= control target key start
LH: loop header
LB: loop body
LE: loop exit
PB: predicated region body
PF: predicated region fallthrough
CT: control target
= control target key end

     0   :  { %13 = vsyncpa [#allocation3], 0  ;;  %s1133_s0 = inlined_call_operand.hbm [shape: f32[8,128], index: 0, kind: input, shape index: {}]   ;;  %s1134_s1 = inlined_call_operand.hbm [shape: f32[128,128], index: 1, kind: input, shape index: {}]   ;;  %s1135_s2 = inlined_call_operand.hbm [shape: f32[128,128], index: 2, kind: input, shape index: {}]   ;;  %s1136_s3 = inlined_call_operand.vmem [shape: f32[1,128], index: 3, kind: input, shape index: {}]   ;;  %s1137_s4 = inlined_call_operand.hbm [shape: f32[128,128], index: 4, kind: input, shape index: {}]   ;;  %s1138_s5 = inlined_call_operand.vmem [shape: f32[1,128], index: 5, kind: input, shape index: {}]   ;;  %s1139_s6 = inlined_call_operand.hbm [shape: f32[128,128], index: 6, kind: input, shape index: {}]   ;;  %s1140_s7 = inlined_call_operand.vmem [shape: f32[1,128], index: 7, kind: input, shape index: {}]   ;;  %s1141_s8 = inlined_call_operand.hbm [shape: f32[8,128], index: 8, kind: output, shape index: {}]  }
   0x1   :  { %14 = vsyncpa [#allocation6], 0 }
   0x2   :  { %15 = vsyncpa [#allocation9], 0 }
   0x3   :  { %16 = vsyncpa [#allocation4], 0  ;;  %s944_s27 = smov [#allocation5]   ;;  %s804_s9 = scalar_lea.hbm %s1134_s1, 2048 }
   0x4   :  { %s32_s28 = sshll.u32 %s944_s27, 4  ;;  %p805_p0 = scmp.ne.s32.totalorder %s1134_s1, %s804_s9  ;;  %s33_s28 = int_to_ptr.vmem [resolvable:$true] %s32_s28 }
   0x5   :  { %p808_p1 = scmp.lt.u32.totalorder %s804_s9, %s1134_s1 }
   0x7   :  { %p810_p2 = pnand %p808_p1, %p805_p0 }
   0x9   :  { %813 = shalt.err (!%p810_p2)
}
   0xa   :  { %s814_s14 = scalar_lea.vmem %s33_s28, 2048  ;;  %p819_p4 = scmp.lt.s32.totalorder %s33_s28, %s33_s28 }
   0xb   :  { %p815_p3 = scmp.ne.s32.totalorder %s33_s28, %s814_s14  ;;  %p820_p5 = scmp.lt.s32.totalorder %s814_s14, %s814_s14 }
   0xd   :  { %p821_p6 = por %p820_p5, %p819_p4 }
   0xf   :  { %p822_p7 = pnand %p821_p6, %p815_p3 }
  0x11   :  { %825 = shalt.err (!%p822_p7)
}
  0x12   :  { %s945_s15 = smov 128   ;;  %s946_s16 = smov 8  }
  0x13   :  { %38 = dma.hbm_to_vmem [thread:$0]  %s1134_s1, 2048, %s33_s28, [#allocation6], %s945_s15, %s945_s15, %s946_s16  }
  0x14   :  { %s947_s19 = smov [#allocation8]   ;;  %s948_s21 = smov [#allocation2]  }
  0x15   :  { %s58_s20 = sshll.u32 %s947_s19, 4  ;;  %s23_s22 = sshll.u32 %s948_s21, 4  ;;  %s59_s20 = int_to_ptr.vmem [resolvable:$true] %s58_s20  ;;  %s24_s22 = int_to_ptr.vmem [resolvable:$true] %s23_s22 }
  0x16   :  { %s826_s25 = scalar_lea.hbm %s1137_s4, 2048 }
  0x17   :  { %p827_p8 = scmp.ne.s32.totalorder %s1137_s4, %s826_s25  ;;  %p830_p9 = scmp.lt.u32.totalorder %s826_s25, %s1137_s4 }
  0x19   :  { %p832_p10 = pnand %p830_p9, %p827_p8 }
  0x1b   :  { %835 = shalt.err (!%p832_p10)
}
  0x1c   :  { %s836_s1 = scalar_lea.vmem %s59_s20, 2048  ;;  %p841_p12 = scmp.lt.s32.totalorder %s59_s20, %s59_s20 }
  0x1d   :  { %p837_p11 = scmp.ne.s32.totalorder %s59_s20, %s836_s1  ;;  %p842_p13 = scmp.lt.s32.totalorder %s836_s1, %s836_s1 }
  0x1f   :  { %p843_p0 = por %p842_p13, %p841_p12 }
  0x21   :  { %p844_p1 = pnand %p843_p0, %p837_p11 }
  0x23   :  { %847 = shalt.err (!%p844_p1)
}
  0x24   :  { %64 = dma.hbm_to_vmem [thread:$0]  %s1137_s4, 2048, %s59_s20, [#allocation9], %s945_s15, %s945_s15, %s946_s16  }
  0x25   :  { %s848_s12 = scalar_lea.hbm %s1133_s0, 128 }
  0x26   :  { %p849_p2 = scmp.ne.s32.totalorder %s1133_s0, %s848_s12  ;;  %p852_p3 = scmp.lt.u32.totalorder %s848_s12, %s1133_s0 }
  0x28   :  { %p854_p4 = pnand %p852_p3, %p849_p2 }
  0x2a   :  { %857 = shalt.err (!%p854_p4)
}
  0x2b   :  { %s858_s19 = scalar_lea.vmem %s24_s22, 128  ;;  %p863_p6 = scmp.lt.s32.totalorder %s24_s22, %s24_s22 }
  0x2c   :  { %p859_p5 = scmp.ne.s32.totalorder %s24_s22, %s858_s19  ;;  %p864_p7 = scmp.lt.s32.totalorder %s858_s19, %s858_s19 }
  0x2e   :  { %p865_p8 = por %p864_p7, %p863_p6 }
  0x30   :  { %p866_p9 = pnand %p865_p8, %p859_p5 }
  0x32   :  { %869 = shalt.err (!%p866_p9)
}
  0x33   :  { %26 = dma.hbm_to_vmem [thread:$0]  %s1133_s0, 128, %s24_s22, [#allocation3]  }
  0x34   :  { %s949_s21 = smov [#allocation7]   ;;  %s950_s24 = smov [#allocation10]  }
  0x35   :  { %s44_s23 = sshll.u32 %s949_s21, 4  ;;  %s72_s25 = sshll.u32 %s950_s24, 4  ;;  %s45_s23 = int_to_ptr.vmem [resolvable:$true] %s44_s23  ;;  %s73_s25 = int_to_ptr.vmem [resolvable:$true] %s72_s25 }
  0x36   :  { %s870_s29 = scalar_lea.hbm %s1135_s2, 2048 }
  0x37   :  { %p871_p10 = scmp.ne.s32.totalorder %s1135_s2, %s870_s29  ;;  %p874_p11 = scmp.lt.u32.totalorder %s870_s29, %s1135_s2 }
  0x39   :  { %p876_p12 = pnand %p874_p11, %p871_p10 }
  0x3b   :  { %879 = shalt.err (!%p876_p12)
}
  0x3c   :  { %s880_s0 = scalar_lea.vmem %s45_s23, 2048  ;;  %p885_p0 = scmp.lt.s32.totalorder %s45_s23, %s45_s23 }
  0x3d   :  { %p881_p13 = scmp.ne.s32.totalorder %s45_s23, %s880_s0  ;;  %p886_p1 = scmp.lt.s32.totalorder %s880_s0, %s880_s0 }
  0x3f   :  { %p887_p2 = por %p886_p1, %p885_p0 }
  0x41   :  { %p888_p3 = pnand %p887_p2, %p881_p13 }
  0x43   :  { %891 = shalt.err (!%p888_p3)
}
  0x44   :  { %50 = dma.hbm_to_vmem [thread:$0]  %s1135_s2, 2048, %s45_s23, [#allocation6], %s945_s15, %s945_s15, %s946_s16  }
  0x45   :  { %s892_s13 = scalar_lea.hbm %s1139_s6, 2048 }
  0x46   :  { %p893_p4 = scmp.ne.s32.totalorder %s1139_s6, %s892_s13  ;;  %p896_p5 = scmp.lt.u32.totalorder %s892_s13, %s1139_s6 }
  0x48   :  { %p898_p6 = pnand %p896_p5, %p893_p4 }
  0x4a   :  { %901 = shalt.err (!%p898_p6)
}
  0x4b   :  { %s902_s4 = scalar_lea.vmem %s73_s25, 2048  ;;  %p907_p8 = scmp.lt.s32.totalorder %s73_s25, %s73_s25 }
  0x4c   :  { %p903_p7 = scmp.ne.s32.totalorder %s73_s25, %s902_s4  ;;  %p908_p9 = scmp.lt.s32.totalorder %s902_s4, %s902_s4 }
  0x4e   :  { %p909_p10 = por %p908_p9, %p907_p8 }
  0x50   :  { %p910_p11 = pnand %p909_p10, %p903_p7 }
  0x52   :  { %913 = shalt.err (!%p910_p11)
}
  0x53   :  { %78 = dma.hbm_to_vmem [thread:$0]  %s1139_s6, 2048, %s73_s25, [#allocation9], %s945_s15, %s945_s15, %s946_s16  }
  0x54   :  { %936 = dma.done.wait [#allocation3], 128  }
  0x55   :  { %937 = vsyncadd [#allocation3], 4294967168 }
  0x56   :  { %938 = dma.done.wait [#allocation6], 4096  }
  0x57   :  { %939 = vsyncadd [#allocation6], 4294963200 }
  0x58   :  { %940 = dma.done.wait [#allocation9], 4096  }
  0x59   :  { %941 = vsyncadd [#allocation9], 4294963200  ;;  %v951_v0 = vmov 0.0|0.0   ;;  %vm952_vm0 = vmmov 0   ;;  %v953_v1 = vmov 0.0   ;;  %v97_v2 = vld [vmem:[#allocation5] sm:$0xff] }
  0x5a   :  { %693 = vmatprep.subr.bf16.mxu0 %v951_v0  ;;  %585 = vmatprep.mubr.msk.f32.mxu0 %vm952_vm0, %v953_v1  ;;  %v98_v3 = vld [vmem:[#allocation5 + $0x8] sm:$0xff]  ;;  %v99_v4 = vld [vmem:[#allocation5 + $0x10] sm:$0xff]  ;;  %v100_v6 = vld [vmem:[#allocation5 + $0x18] sm:$0xff]  ;;  %s954_s24 = smov [#allocation11]  }
  0x5b   :  { %717 = vmatprep.subr.bf16.mxu1 %v951_v0  ;;  %620 = vmatprep.mubr.msk.f32.mxu1 %vm952_vm0, %v953_v1  ;;  %v694_v5 = vpack.c.bf16 %v98_v3, %v97_v2  ;;  %v697_v7 = vpack.c.bf16 %v100_v6, %v99_v4  ;;  %v101_v8 = vld [vmem:[#allocation5 + $0x20] sm:$0xff]  ;;  %v102_v9 = vld [vmem:[#allocation5 + $0x28] sm:$0xff]  ;;  %v185_v12 = vld [vmem:[#allocation7 + $0x10] sm:$0xff]  ;;  %s471_s25 = sshll.u32 %s954_s24, 4  ;;  %s472_s25 = int_to_ptr.vmem [resolvable:$true] %s471_s25 }
  0x5c   :  { %v183_v10 = vld [vmem:[#allocation7] sm:$0xff]  ;;  %v184_v11 = vld [vmem:[#allocation7 + $0x8] sm:$0xff]  ;;  %v186_v13 = vld [vmem:[#allocation7 + $0x18] sm:$0xff]  ;;  %v700_v14 = vpack.c.bf16 %v102_v9, %v101_v8  ;;  %s914_s26 = scalar_lea.vmem %s472_s25, 128  ;;  %p919_p13 = scmp.lt.s32.totalorder %s472_s25, %s472_s25 }
  0x5d   :  { %695 = vmatpush3.bf16.msra.mxu0 %v694_v5  ;;  %v718_v15 = vpack.c.bf16 %v184_v11, %v183_v10  ;;  %v103_v16 = vld [vmem:[#allocation5 + $0x30] sm:$0xff]  ;;  %v104_v17 = vld [vmem:[#allocation5 + $0x38] sm:$0xff]  ;;  %v721_v18 = vpack.c.bf16 %v186_v13, %v185_v12  ;;  %v187_v19 = vld [vmem:[#allocation7 + $0x20] sm:$0xff]  ;;  %p915_p12 = scmp.ne.s32.totalorder %s472_s25, %s914_s26  ;;  %p920_p0 = scmp.lt.s32.totalorder %s914_s26, %s914_s26 }
  0x5e   :  { %696 = vmatprep.subr.bf16.mxu0 %v951_v0  ;;  %v188_v20 = vld [vmem:[#allocation7 + $0x28] sm:$0xff]  ;;  %v703_v21 = vpack.c.bf16 %v104_v17, %v103_v16  ;;  %v105_v22 = vld [vmem:[#allocation5 + $0x40] sm:$0xff]  ;;  %v189_v25 = vld [vmem:[#allocation7 + $0x30] sm:$0xff] }
  0x5f   :  { %719 = vmatpush3.bf16.msra.mxu1 %v718_v15  ;;  %v106_v23 = vld [vmem:[#allocation5 + $0x48] sm:$0xff]  ;;  %v724_v24 = vpack.c.bf16 %v188_v20, %v187_v19  ;;  %v190_v26 = vld [vmem:[#allocation7 + $0x38] sm:$0xff]  ;;  %v107_v28 = vld [vmem:[#allocation5 + $0x50] sm:$0xff]  ;;  %p921_p1 = por %p920_p0, %p919_p13 }
  0x60   :  { %720 = vmatprep.subr.bf16.mxu1 %v951_v0  ;;  %v706_v27 = vpack.c.bf16 %v106_v23, %v105_v22  ;;  %v108_v29 = vld [vmem:[#allocation5 + $0x58] sm:$0xff]  ;;  %v727_v30 = vpack.c.bf16 %v190_v26, %v189_v25  ;;  %v191_v31 = vld [vmem:[#allocation7 + $0x40] sm:$0xff]  ;;  %v192_v32 = vld [vmem:[#allocation7 + $0x48] sm:$0xff] }
  0x61   :  { %698 = vmatpush3.bf16.msra.mxu0 %v697_v7  ;;  %v709_v33 = vpack.c.bf16 %v108_v29, %v107_v28  ;;  %v109_v34 = vld [vmem:[#allocation5 + $0x60] sm:$0xff]  ;;  %v110_v35 = vld [vmem:[#allocation5 + $0x68] sm:$0xff]  ;;  %v730_v36 = vpack.c.bf16 %v192_v32, %v191_v31  ;;  %v193_v37 = vld [vmem:[#allocation7 + $0x50] sm:$0xff]  ;;  %p922_p2 = pnand %p921_p1, %p915_p12 }
  0x62   :  { %699 = vmatprep.subr.bf16.mxu0 %v951_v0  ;;  %v194_v38 = vld [vmem:[#allocation7 + $0x58] sm:$0xff]  ;;  %v712_v39 = vpack.c.bf16 %v110_v35, %v109_v34  ;;  %v111_v40 = vld [vmem:[#allocation5 + $0x70] sm:$0xff]  ;;  %v195_v43 = vld [vmem:[#allocation7 + $0x60] sm:$0xff] }
  0x63   :  { %722 = vmatpush3.bf16.msra.mxu1 %v721_v18  ;;  %v112_v41 = vld [vmem:[#allocation5 + $0x78] sm:$0xff]  ;;  %v733_v42 = vpack.c.bf16 %v194_v38, %v193_v37  ;;  %v196_v44 = vld [vmem:[#allocation7 + $0x68] sm:$0xff]  ;;  %v197_v47 = vld [vmem:[#allocation7 + $0x70] sm:$0xff] }
  0x64   :  { %723 = vmatprep.subr.bf16.mxu1 %v951_v0  ;;  %v715_v45 = vpack.c.bf16 %v112_v41, %v111_v40  ;;  %v736_v46 = vpack.c.bf16 %v196_v44, %v195_v43  ;;  %v198_v48 = vld [vmem:[#allocation7 + $0x78] sm:$0xff]  ;;  %v277_v51 = vld [vmem:[#allocation8] sm:$0xff]  ;;  %v278_v52 = vld [vmem:[#allocation8 + $0x8] sm:$0xff] }
  0x65   :  { %701 = vmatpush3.bf16.msra.mxu0 %v700_v14  ;;  %v96_v49 = vld [vmem:[#allocation2] sm:$0xff]  ;;  %v739_v50 = vpack.c.bf16 %v198_v48, %v197_v47  ;;  %v279_v53 = vld [vmem:[#allocation8 + $0x10] sm:$0xff]  ;;  %v742_v54 = vpack.c.bf16 %v278_v52, %v277_v51  ;;  %v281_v57 = vld [vmem:[#allocation8 + $0x20] sm:$0xff] }
  0x66   :  { %702 = vmatprep.subr.bf16.mxu0 %v951_v0  ;;  %v280_v55 = vld [vmem:[#allocation8 + $0x18] sm:$0xff]  ;;  %v282_v58 = vld [vmem:[#allocation8 + $0x28] sm:$0xff]  ;;  %v283_v60 = vld [vmem:[#allocation8 + $0x30] sm:$0xff] }
  0x67   :  { %725 = vmatpush3.bf16.msra.mxu1 %v724_v24  ;;  %v745_v56 = vpack.c.bf16 %v280_v55, %v279_v53  ;;  %v748_v59 = vpack.c.bf16 %v282_v58, %v281_v57  ;;  %v284_v61 = vld [vmem:[#allocation8 + $0x38] sm:$0xff]  ;;  %v285_v63 = vld [vmem:[#allocation8 + $0x40] sm:$0xff]  ;;  %v286_v2 = vld [vmem:[#allocation8 + $0x48] sm:$0xff] }
  0x68   :  { %726 = vmatprep.subr.bf16.mxu1 %v951_v0  ;;  %v751_v62 = vpack.c.bf16 %v284_v61, %v283_v60  ;;  %v754_v3 = vpack.c.bf16 %v286_v2, %v285_v63  ;;  %v287_v6 = vld [vmem:[#allocation8 + $0x50] sm:$0xff]  ;;  %v288_v7 = vld [vmem:[#allocation8 + $0x58] sm:$0xff]  ;;  %v289_v9 = vld [vmem:[#allocation8 + $0x60] sm:$0xff] }
  0x69   :  { %704 = vmatpush3.bf16.msra.mxu0 %v703_v21  ;;  %v757_v8 = vpack.c.bf16 %v288_v7, %v287_v6  ;;  %v290_v10 = vld [vmem:[#allocation8 + $0x68] sm:$0xff]  ;;  %v291_v12 = vld [vmem:[#allocation8 + $0x70] sm:$0xff]  ;;  %v292_v13 = vld [vmem:[#allocation8 + $0x78] sm:$0xff] }
  0x6a   :  { %705 = vmatprep.subr.bf16.mxu0 %v951_v0  ;;  %v760_v11 = vpack.c.bf16 %v290_v10, %v289_v9  ;;  %v763_v14 = vpack.c.bf16 %v292_v13, %v291_v12  ;;  %v371_v15 = vld [vmem:[#allocation10] sm:$0xff]  ;;  %v372_v16 = vld [vmem:[#allocation10 + $0x8] sm:$0xff]  ;;  %v373_v17 = vld [vmem:[#allocation10 + $0x10] sm:$0xff] }
  0x6b   :  { %728 = vmatpush3.bf16.msra.mxu1 %v727_v30  ;;  %v374_v18 = vld [vmem:[#allocation10 + $0x18] sm:$0xff]  ;;  %v375_v20 = vld [vmem:[#allocation10 + $0x20] sm:$0xff]  ;;  %v376_v21 = vld [vmem:[#allocation10 + $0x28] sm:$0xff] }
  0x6c   :  { %729 = vmatprep.subr.bf16.mxu1 %v951_v0  ;;  %v769_v19 = vpack.c.bf16 %v374_v18, %v373_v17  ;;  %v772_v22 = vpack.c.bf16 %v376_v21, %v375_v20  ;;  %v377_v23 = vld [vmem:[#allocation10 + $0x30] sm:$0xff]  ;;  %v378_v24 = vld [vmem:[#allocation10 + $0x38] sm:$0xff]  ;;  %v379_v26 = vld [vmem:[#allocation10 + $0x40] sm:$0xff] }
  0x6d   :  { %707 = vmatpush3.bf16.msra.mxu0 %v706_v27  ;;  %v775_v25 = vpack.c.bf16 %v378_v24, %v377_v23  ;;  %v380_v27 = vld [vmem:[#allocation10 + $0x48] sm:$0xff]  ;;  %v482_v29 = vld [vmem:[%s1136_s3] ss:$0 sm:$0xff]  ;;  %v381_v34 = vld [vmem:[#allocation10 + $0x50] sm:$0xff] }
  0x6e   :  { %708 = vmatprep.subr.bf16.mxu0 %v951_v0  ;;  %v778_v28 = vpack.c.bf16 %v380_v27, %v379_v26  ;;  %v382_v35 = vld [vmem:[#allocation10 + $0x58] sm:$0xff]  ;;  %v383_v37 = vld [vmem:[#allocation10 + $0x60] sm:$0xff]  ;;  %v384_v38 = vld [vmem:[#allocation10 + $0x68] sm:$0xff] }
  0x6f   :  { %731 = vmatpush3.bf16.msra.mxu1 %v730_v36  ;;  %v781_v36 = vpack.c.bf16 %v382_v35, %v381_v34  ;;  %v385_v40 = vld [vmem:[#allocation10 + $0x70] sm:$0xff]  ;;  %v386_v41 = vld [vmem:[#allocation10 + $0x78] sm:$0xff] }
  0x70   :  { %732 = vmatprep.subr.bf16.mxu1 %v951_v0  ;;  %v483_v43 = vld [vmem:[%s1138_s5] ss:$0 sm:$0xff] }
  0x71   :  { %710 = vmatpush3.bf16.msra.mxu0 %v709_v33  ;;  %v484_v48 = vld [vmem:[%s1140_s7] ss:$0 sm:$0xff] }
  0x72   :  { %711 = vmatprep.subr.bf16.mxu0 %v951_v0 }
  0x73   :  { %734 = vmatpush3.bf16.msra.mxu1 %v733_v42  ;;  %v787_v42 = vpack.c.bf16 %v386_v41, %v385_v40 }
  0x74   :  { %735 = vmatprep.subr.bf16.mxu1 %v951_v0 }
  0x75   :  { %713 = vmatpush3.bf16.msra.mxu0 %v712_v39  ;;  %v784_v39 = vpack.c.bf16 %v384_v38, %v383_v37 }
  0x76   :  { %714 = vmatprep.subr.bf16.mxu0 %v951_v0 }
  0x77   :  { %737 = vmatpush3.bf16.msra.mxu1 %v736_v46 }
  0x78   :  { %738 = vmatprep.subr.bf16.mxu1 %v951_v0 }
  0x79   :  { %716 = vmatpush3.bf16.msra.mxu0 %v715_v45 }
  0x7a   :  { %741 = vmatprep.subr.bf16.mxu0 %v951_v0 }
  0x7b   :  { %740 = vmatpush3.bf16.msra.mxu1 %v739_v50 }
  0x7c   :  { %586 = vmatmul.mubr.f32.vlgmr.msra.gmra.mrb[0].mxu0 %v96_v49  ;;  %765 = vmatprep.subr.bf16.mxu1 %v951_v0 }
  0x7d   :  { %655 = vmatprep.mubr.msk.f32.mxu0 %vm952_vm0, %v953_v1  ;;  %743 = vmatpush3.bf16.msra.mxu0 %v742_v54 }
  0x7e   :  { %744 = vmatprep.subr.bf16.mxu0 %v951_v0 }
  0x81   :  { %746 = vmatpush3.bf16.msra.mxu0 %v745_v56 }
  0x82   :  { %747 = vmatprep.subr.bf16.mxu0 %v951_v0 }
  0x85   :  { %749 = vmatpush3.bf16.msra.mxu0 %v748_v59 }
  0x86   :  { %750 = vmatprep.subr.bf16.mxu0 %v951_v0 }
  0x89   :  { %752 = vmatpush3.bf16.msra.mxu0 %v751_v62 }
  0x8a   :  { %753 = vmatprep.subr.bf16.mxu0 %v951_v0 }
  0x8d   :  { %755 = vmatpush3.bf16.msra.mxu0 %v754_v3 }
  0x8e   :  { %756 = vmatprep.subr.bf16.mxu0 %v951_v0 }
  0x91   :  { %758 = vmatpush3.bf16.msra.mxu0 %v757_v8 }
  0x92   :  { %759 = vmatprep.subr.bf16.mxu0 %v951_v0 }
  0x95   :  { %761 = vmatpush3.bf16.msra.mxu0 %v760_v11 }
  0x96   :  { %762 = vmatprep.subr.bf16.mxu0 %v951_v0 }
  0x99   :  { %764 = vmatpush3.bf16.msra.mxu0 %v763_v14 }
 0x14f   :  { %v179_v4 = vpop.f32.mrb[0].mxu0 }
 0x150   :  { %v587_v5 = vpop.f32.mrb[1].mxu0  ;;  %621 = vmatmul.mubr.f32.vlgmr.msra.gmra.mrb[0].mxu1 %v179_v4 }
 0x151   :  { %690 = vmatprep.mubr.msk.f32.mxu1 %vm952_vm0, %v953_v1  ;;  %v766_v1 = vpack.c.bf16 %v372_v16, %v371_v15 }
 0x153   :  { %767 = vmatpush3.bf16.msra.mxu1 %v766_v1 }
 0x154   :  { %768 = vmatprep.subr.bf16.mxu1 %v951_v0 }
 0x157   :  { %770 = vmatpush3.bf16.msra.mxu1 %v769_v19 }
 0x158   :  { %771 = vmatprep.subr.bf16.mxu1 %v951_v0 }
 0x15b   :  { %773 = vmatpush3.bf16.msra.mxu1 %v772_v22 }
 0x15c   :  { %774 = vmatprep.subr.bf16.mxu1 %v951_v0 }
 0x15f   :  { %776 = vmatpush3.bf16.msra.mxu1 %v775_v25 }
 0x160   :  { %777 = vmatprep.subr.bf16.mxu1 %v951_v0 }
 0x163   :  { %779 = vmatpush3.bf16.msra.mxu1 %v778_v28 }
 0x164   :  { %780 = vmatprep.subr.bf16.mxu1 %v951_v0 }
 0x167   :  { %782 = vmatpush3.bf16.msra.mxu1 %v781_v36 }
 0x168   :  { %783 = vmatprep.subr.bf16.mxu1 %v951_v0 }
 0x16b   :  { %785 = vmatpush3.bf16.msra.mxu1 %v784_v39 }
 0x16c   :  { %786 = vmatprep.subr.bf16.mxu1 %v951_v0 }
 0x16f   :  { %788 = vmatpush3.bf16.msra.mxu1 %v787_v42 }
 0x223   :  { %v272_v30 = vpop.f32.mrb[0].mxu1 }
 0x224   :  { %v273_v31 = vadd.f32 %v482_v29, %v272_v30  ;;  %v622_v32 = vpop.f32.mrb[1].mxu1 }
 0x226   :  { %800 = vtanh.f32 %v273_v31 }
 0x230   :  { %v801_v33 = vpop.eup %800 }
 0x231   :  { %656 = vmatmul.mubr.f32.vlgmr.msra.gmra.mrb[2].mxu0 %v801_v33 }
 0x304   :  { %v366_v44 = vpop.f32.mrb[2].mxu0 }
 0x305   :  { %v367_v45 = vadd.f32 %v483_v43, %v366_v44  ;;  %v657_v46 = vpop.f32.mrb[3].mxu0 }
 0x307   :  { %802 = vtanh.f32 %v367_v45 }
 0x311   :  { %v803_v47 = vpop.eup %802 }
 0x312   :  { %691 = vmatmul.mubr.f32.vlgmr.msra.gmra.mrb[2].mxu1 %v803_v47 }
 0x3e5   :  { %v460_v49 = vpop.f32.mrb[2].mxu1 }
 0x3e6   :  { %v461_v50 = vadd.f32 %v484_v48, %v460_v49  ;;  %v692_v0 = vpop.f32.mrb[3].mxu1 }
 0x3e8   :  { %464 = vst [vmem:[#allocation11] sm:$0xff] %v461_v50 }
 0x3e9   :  { %925 = shalt.err (!%p922_p2)
}
 0x3ea   :  { %s926_s29 = scalar_lea.hbm %s1141_s8, 128 }
 0x3eb   :  { %p927_p3 = scmp.ne.s32.totalorder %s1141_s8, %s926_s29  ;;  %p930_p4 = scmp.lt.u32.totalorder %s926_s29, %s1141_s8 }
 0x3ed   :  { %p932_p5 = pnand %p930_p4, %p927_p3 }
 0x3ef   :  { %935 = shalt.err (!%p932_p5)
}
 0x3f0   :  { %474 = dma.vmem_to_hbm [thread:$0]  %s472_s25, 128, %s1141_s8, [#allocation4]  }
 0x3f1   :  { %942 = dma.done.wait [#allocation4], 128  }
 0x3f2   :  { %943 = vsyncadd [#allocation4], 4294967168 }
 0x3f3   :  { %478 = vsyncpa [#allocation3], 1 }
 0x3f4   :  { %479 = vsyncpa [#allocation6], 1 }
 0x3f5   :  { %480 = vsyncpa [#allocation9], 1 }
 0x3f6   :  { %481 = vsyncpa [#allocation4], 1 }

</bundles_post_ra>
